<compile_context>
chip_gen: v6e
topology: v6e:2x2x1
jax: 0.10.0
libtpu: 0.0.40
codegen_flags: <defaults>
</compile_context>

<pallas_src>
import functools

import jax
import jax.numpy as jnp
from jax.experimental import pallas as pl
from jax.experimental.pallas import tpu as pltpu


def _dwconv_kernel(x_ref, w_ref, o_ref, *, K, stride, padding, dm,
                   H, W, H_out, W_out, row_strip):
    # x_ref: (C_in_blk, H, W)        NCHW input block (W on lanes, H on sublanes)
    # w_ref: (C_out_blk, K, K)       per-channel depthwise weights
    # o_ref: (C_out_blk, H_out, W_out)
    c_out_blk = o_ref.shape[0]
    c_in_blk = x_ref.shape[0]
    f32 = jnp.float32

    # Hoist the K*K per-tap weights once (tiny).  Each tap is a (C_blk,1,1) value
    # broadcast over the whole strip; doing this outside the strip loop avoids
    # re-emitting broadcast_in_dim per strip/tap.
    w = w_ref[...].astype(f32)
    w_taps = [[w[:, kh:kh + 1, kw:kw + 1] for kw in range(K)] for kh in range(K)]

    if stride == 1 and padding == 0:
        # ---- Fast path (module default): unit-stride, fully-valid tap windows ----
        # Row-strip loop keeps the accumulator in vregs and stores each strip once.
        n_strips = (H_out + row_strip - 1) // row_strip
        for s in range(n_strips):                       # static Python loop (few strips)
            r0 = s * row_strip
            nrows = min(row_strip, H_out - r0)
            acc = jnp.zeros((c_out_blk, nrows, W_out), f32)
            for kh in range(K):
                for kw in range(K):
                    # Static slice straight from the VMEM ref: vld only, no big live
                    # input value, no extra stores.  kw offsets are cheap lane shifts,
                    # kh/row offsets are sublane/address offsets.
                    win = x_ref[:, r0 + kh:r0 + kh + nrows, kw:kw + W_out].astype(f32)
                    if dm > 1:
                        # Replicate input channels for depth_multiplier inside VMEM/vregs
                        # (out channel o uses input channel o // dm, PyTorch ordering).
                        win = jnp.repeat(win, dm, axis=0)
                    acc = acc + win * w_taps[kh][kw]
            o_ref[:, r0:r0 + nrows, :] = acc.astype(o_ref.dtype)
    else:
        # ---- General path (padding > 0 and/or stride > 1): correct, not tuned ----
        x = x_ref[...]
        if padding > 0:
            # Functional zero-pad in registers: no persistent scratch, no per-step
            # full-buffer zeroing, no VMEM->VMEM staging copy.
            xz = jnp.zeros((c_in_blk, H + 2 * padding, W + 2 * padding), x.dtype)
            x = jax.lax.dynamic_update_slice(xz, x, (0, padding, padding))
        x = x.astype(f32)
        if dm > 1:
            x = jnp.repeat(x, dm, axis=0)
        acc = jnp.zeros((c_out_blk, H_out, W_out), f32)
        for kh in range(K):
            for kw in range(K):
                # TODO(synk): stride>1 uses strided lane/sublane slices; deinterleave
                # phases in the wrapper if a strided config ever becomes hot.
                win = jax.lax.slice(
                    x,
                    (0, kh, kw),
                    (c_out_blk, kh + (H_out - 1) * stride + 1,
                     kw + (W_out - 1) * stride + 1),
                    (1, stride, stride),
                )
                acc = acc + win * w_taps[kh][kw]
        o_ref[...] = acc.astype(o_ref.dtype)


def depthwise_conv2d(x, w, *, stride=1, padding=0):
    """x: (N, C, H, W); w: (C*dm, 1, K, K). Returns (N, C*dm, H_out, W_out)."""
    N, C, H, W = x.shape
    C_out, _, K, K2 = w.shape
    assert K == K2
    dm = C_out // C
    assert C * dm == C_out

    H_out = (H + 2 * padding - K) // stride + 1
    W_out = (W + 2 * padding - K) // stride + 1

    # No layout plumbing: kernel consumes NCHW directly.  Only drop the singleton
    # "in-channels-per-group" weight dim (free reshape on a tiny array).
    w_ckk = w.reshape(C_out, K, K)

    # Channel-block sizing: aim for ~1 MiB of input per grid step (amortizes per-step
    # overhead, stays well under scoped VMEM on v5e/v6e/v7x).  Block must divide C_out
    # and be a multiple of dm so a contiguous out-channel block maps to a contiguous
    # in-channel block.
    itemsize = x.dtype.itemsize
    target_bytes = 1 << 20
    bytes_per_in_channel = max(1, H * W * itemsize)
    want_in = max(1, min(C, target_bytes // bytes_per_in_channel))
    want_out = want_in * dm
    c_blk = dm
    for cand in range(dm, C_out + 1, dm):
        if C_out % cand == 0 and cand <= want_out:
            c_blk = cand
    c_in_blk = c_blk // dm
    n_cblk = C_out // c_blk

    kernel = functools.partial(
        _dwconv_kernel, K=K, stride=stride, padding=padding, dm=dm,
        H=H, W=W, H_out=H_out, W_out=W_out, row_strip=8,
    )

    cost = pl.CostEstimate(
        flops=2 * N * C_out * H_out * W_out * K * K,
        transcendentals=0,
        bytes_accessed=(x.size + w_ckk.size + N * C_out * H_out * W_out) * itemsize,
    )

    out = pl.pallas_call(
        kernel,
        out_shape=jax.ShapeDtypeStruct((N, C_out, H_out, W_out), x.dtype),
        grid_spec=pltpu.PrefetchScalarGridSpec(
            num_scalar_prefetch=0,
            grid=(N, n_cblk),
            in_specs=[
                pl.BlockSpec((pl.Squeezed(), c_in_blk, H, W),
                             lambda n, c: (n, c, 0, 0)),
                pl.BlockSpec((c_blk, K, K), lambda n, c: (c, 0, 0)),
            ],
            out_specs=pl.BlockSpec((pl.Squeezed(), c_blk, H_out, W_out),
                                   lambda n, c: (n, c, 0, 0)),
        ),
        compiler_params=pltpu.CompilerParams(
            dimension_semantics=("parallel", "parallel"),
        ),
        cost_estimate=cost,
    )(x, w_ckk)

    return out


if __name__ == "__main__":
    # Module config: DepthwiseConv2D(channels=4, kernel_size=3, depth_multiplier=1,
    #                                stride=1, padding=0)
    N, C, H, W = 2, 4, 16, 16
    K = 3
    depth_multiplier = 1
    stride = 1
    padding = 0

    key = jax.random.PRNGKey(0)
    kx, kw = jax.random.split(key)
    x = jax.random.normal(kx, (N, C, H, W), dtype=jnp.float32)
    # Same shape as nn.Conv2d weight: (C*dm, 1, K, K)
    weight = jax.random.normal(
        kw, (C * depth_multiplier, 1, K, K), dtype=jnp.float32
    ) * 0.1

    out = depthwise_conv2d(x, weight, stride=stride, padding=padding)
    out = jax.block_until_ready(out)

    # Reference check against XLA's grouped conv (same semantics as PyTorch NCHW conv).
    ref = jax.lax.conv_general_dilated(
        x,
        weight,
        window_strides=(stride, stride),
        padding=[(padding, padding), (padding, padding)],
        dimension_numbers=("NCHW", "OIHW", "NCHW"),
        feature_group_count=C,
    )
    H_out = (H + 2 * padding - K) // stride + 1
    W_out = (W + 2 * padding - K) // stride + 1
    assert out.shape == ref.shape == (N, C * depth_multiplier, H_out, W_out)
    assert jnp.allclose(out, ref, atol=1e-4, rtol=1e-4)

    print("KERNEL_OK")
</pallas_src>

<mosaic_0001>
module attributes {stable_mosaic.version = 11 : i64} {
  func.func @_dwconv_kernel(%arg0: i32, %arg1: i32, %arg2: memref<1x4x16x16xf32, #tpu.memory_space<vmem>>, %arg3: memref<4x3x3xf32, #tpu.memory_space<vmem>>, %arg4: memref<1x4x14x14xf32, #tpu.memory_space<vmem>>) attributes {dimension_semantics = [#tpu.dimension_semantics<parallel>, #tpu.dimension_semantics<parallel>], iteration_bounds = array<i64: 2, 1>, scalar_prefetch = 0 : i64, scratch_operands = 0 : i64, tpu.core_type = #tpu.core_type<tc>, window_params = [{transform_indices = @transform_0, window_bounds = array<i64: 1, 4, 16, 16>}, {transform_indices = @transform_1, window_bounds = array<i64: 4, 3, 3>}, {transform_indices = @transform_2, window_bounds = array<i64: 1, 4, 14, 14>}]} {
    %c0 = arith.constant 0 : index
    %c0_0 = arith.constant 0 : index
    %c0_1 = arith.constant 0 : index
    %0 = vector.load %arg3[%c0, %c0_0, %c0_1] : memref<4x3x3xf32, #tpu.memory_space<vmem>>, vector<4x3x3xf32>
    %1 = vector.extract_strided_slice %0 {offsets = [0, 0, 0], sizes = [4, 1, 1], strides = [1, 1, 1]} : vector<4x3x3xf32> to vector<4x1x1xf32>
    %2 = vector.extract_strided_slice %0 {offsets = [0, 0, 1], sizes = [4, 1, 1], strides = [1, 1, 1]} : vector<4x3x3xf32> to vector<4x1x1xf32>
    %3 = vector.extract_strided_slice %0 {offsets = [0, 0, 2], sizes = [4, 1, 1], strides = [1, 1, 1]} : vector<4x3x3xf32> to vector<4x1x1xf32>
    %4 = vector.extract_strided_slice %0 {offsets = [0, 1, 0], sizes = [4, 1, 1], strides = [1, 1, 1]} : vector<4x3x3xf32> to vector<4x1x1xf32>
    %5 = vector.extract_strided_slice %0 {offsets = [0, 1, 1], sizes = [4, 1, 1], strides = [1, 1, 1]} : vector<4x3x3xf32> to vector<4x1x1xf32>
    %6 = vector.extract_strided_slice %0 {offsets = [0, 1, 2], sizes = [4, 1, 1], strides = [1, 1, 1]} : vector<4x3x3xf32> to vector<4x1x1xf32>
    %7 = vector.extract_strided_slice %0 {offsets = [0, 2, 0], sizes = [4, 1, 1], strides = [1, 1, 1]} : vector<4x3x3xf32> to vector<4x1x1xf32>
    %8 = vector.extract_strided_slice %0 {offsets = [0, 2, 1], sizes = [4, 1, 1], strides = [1, 1, 1]} : vector<4x3x3xf32> to vector<4x1x1xf32>
    %9 = vector.extract_strided_slice %0 {offsets = [0, 2, 2], sizes = [4, 1, 1], strides = [1, 1, 1]} : vector<4x3x3xf32> to vector<4x1x1xf32>
    %cst = arith.constant 0.000000e+00 : f32
    %10 = vector.broadcast %cst : f32 to vector<4x8x14xf32>
    %c0_2 = arith.constant 0 : index
    %c0_3 = arith.constant 0 : index
    %c0_4 = arith.constant 0 : index
    %c0_5 = arith.constant 0 : index
    %11 = vector.load %arg2[%c0_2, %c0_3, %c0_4, %c0_5] : memref<1x4x16x16xf32, #tpu.memory_space<vmem>>, vector<1x4x8x14xf32>
    %12 = vector.shape_cast %11 : vector<1x4x8x14xf32> to vector<4x8x14xf32>
    %13 = vector.broadcast %1 : vector<4x1x1xf32> to vector<4x8x14xf32>
    %14 = arith.mulf %12, %13 : vector<4x8x14xf32>
    %15 = arith.addf %10, %14 : vector<4x8x14xf32>
    %c0_6 = arith.constant 0 : index
    %c0_7 = arith.constant 0 : index
    %c0_8 = arith.constant 0 : index
    %c1 = arith.constant 1 : index
    %16 = vector.load %arg2[%c0_6, %c0_7, %c0_8, %c1] : memref<1x4x16x16xf32, #tpu.memory_space<vmem>>, vector<1x4x8x14xf32>
    %17 = vector.shape_cast %16 : vector<1x4x8x14xf32> to vector<4x8x14xf32>
    %18 = vector.broadcast %2 : vector<4x1x1xf32> to vector<4x8x14xf32>
    %19 = arith.mulf %17, %18 : vector<4x8x14xf32>
    %20 = arith.addf %15, %19 : vector<4x8x14xf32>
    %c0_9 = arith.constant 0 : index
    %c0_10 = arith.constant 0 : index
    %c0_11 = arith.constant 0 : index
    %c2 = arith.constant 2 : index
    %21 = vector.load %arg2[%c0_9, %c0_10, %c0_11, %c2] : memref<1x4x16x16xf32, #tpu.memory_space<vmem>>, vector<1x4x8x14xf32>
    %22 = vector.shape_cast %21 : vector<1x4x8x14xf32> to vector<4x8x14xf32>
    %23 = vector.broadcast %3 : vector<4x1x1xf32> to vector<4x8x14xf32>
    %24 = arith.mulf %22, %23 : vector<4x8x14xf32>
    %25 = arith.addf %20, %24 : vector<4x8x14xf32>
    %c0_12 = arith.constant 0 : index
    %c0_13 = arith.constant 0 : index
    %c1_14 = arith.constant 1 : index
    %c0_15 = arith.constant 0 : index
    %26 = vector.load %arg2[%c0_12, %c0_13, %c1_14, %c0_15] : memref<1x4x16x16xf32, #tpu.memory_space<vmem>>, vector<1x4x8x14xf32>
    %27 = vector.shape_cast %26 : vector<1x4x8x14xf32> to vector<4x8x14xf32>
    %28 = vector.broadcast %4 : vector<4x1x1xf32> to vector<4x8x14xf32>
    %29 = arith.mulf %27, %28 : vector<4x8x14xf32>
    %30 = arith.addf %25, %29 : vector<4x8x14xf32>
    %c0_16 = arith.constant 0 : index
    %c0_17 = arith.constant 0 : index
    %c1_18 = arith.constant 1 : index
    %c1_19 = arith.constant 1 : index
    %31 = vector.load %arg2[%c0_16, %c0_17, %c1_18, %c1_19] : memref<1x4x16x16xf32, #tpu.memory_space<vmem>>, vector<1x4x8x14xf32>
    %32 = vector.shape_cast %31 : vector<1x4x8x14xf32> to vector<4x8x14xf32>
    %33 = vector.broadcast %5 : vector<4x1x1xf32> to vector<4x8x14xf32>
    %34 = arith.mulf %32, %33 : vector<4x8x14xf32>
    %35 = arith.addf %30, %34 : vector<4x8x14xf32>
    %c0_20 = arith.constant 0 : index
    %c0_21 = arith.constant 0 : index
    %c1_22 = arith.constant 1 : index
    %c2_23 = arith.constant 2 : index
    %36 = vector.load %arg2[%c0_20, %c0_21, %c1_22, %c2_23] : memref<1x4x16x16xf32, #tpu.memory_space<vmem>>, vector<1x4x8x14xf32>
    %37 = vector.shape_cast %36 : vector<1x4x8x14xf32> to vector<4x8x14xf32>
    %38 = vector.broadcast %6 : vector<4x1x1xf32> to vector<4x8x14xf32>
    %39 = arith.mulf %37, %38 : vector<4x8x14xf32>
    %40 = arith.addf %35, %39 : vector<4x8x14xf32>
    %c0_24 = arith.constant 0 : index
    %c0_25 = arith.constant 0 : index
    %c2_26 = arith.constant 2 : index
    %c0_27 = arith.constant 0 : index
    %41 = vector.load %arg2[%c0_24, %c0_25, %c2_26, %c0_27] : memref<1x4x16x16xf32, #tpu.memory_space<vmem>>, vector<1x4x8x14xf32>
    %42 = vector.shape_cast %41 : vector<1x4x8x14xf32> to vector<4x8x14xf32>
    %43 = vector.broadcast %7 : vector<4x1x1xf32> to vector<4x8x14xf32>
    %44 = arith.mulf %42, %43 : vector<4x8x14xf32>
    %45 = arith.addf %40, %44 : vector<4x8x14xf32>
    %c0_28 = arith.constant 0 : index
    %c0_29 = arith.constant 0 : index
    %c2_30 = arith.constant 2 : index
    %c1_31 = arith.constant 1 : index
    %46 = vector.load %arg2[%c0_28, %c0_29, %c2_30, %c1_31] : memref<1x4x16x16xf32, #tpu.memory_space<vmem>>, vector<1x4x8x14xf32>
    %47 = vector.shape_cast %46 : vector<1x4x8x14xf32> to vector<4x8x14xf32>
    %48 = vector.broadcast %8 : vector<4x1x1xf32> to vector<4x8x14xf32>
    %49 = arith.mulf %47, %48 : vector<4x8x14xf32>
    %50 = arith.addf %45, %49 : vector<4x8x14xf32>
    %c0_32 = arith.constant 0 : index
    %c0_33 = arith.constant 0 : index
    %c2_34 = arith.constant 2 : index
    %c2_35 = arith.constant 2 : index
    %51 = vector.load %arg2[%c0_32, %c0_33, %c2_34, %c2_35] : memref<1x4x16x16xf32, #tpu.memory_space<vmem>>, vector<1x4x8x14xf32>
    %52 = vector.shape_cast %51 : vector<1x4x8x14xf32> to vector<4x8x14xf32>
    %53 = vector.broadcast %9 : vector<4x1x1xf32> to vector<4x8x14xf32>
    %54 = arith.mulf %52, %53 : vector<4x8x14xf32>
    %55 = arith.addf %50, %54 : vector<4x8x14xf32>
    %c0_36 = arith.constant 0 : index
    %c0_37 = arith.constant 0 : index
    %c0_38 = arith.constant 0 : index
    %c0_39 = arith.constant 0 : index
    %56 = vector.load %arg4[%c0_36, %c0_37, %c0_38, %c0_39] : memref<1x4x14x14xf32, #tpu.memory_space<vmem>>, vector<1x4x8x14xf32>
    %57 = vector.shape_cast %56 : vector<1x4x8x14xf32> to vector<4x8x14xf32>
    %58 = vector.shape_cast %55 : vector<4x8x14xf32> to vector<1x4x8x14xf32>
    tpu.vector_store %arg4[%c0_36, %c0_37, %c0_38, %c0_39], %58 {strides = array<i32>} : memref<1x4x14x14xf32, #tpu.memory_space<vmem>>, vector<1x4x8x14xf32>,
    %cst_40 = arith.constant 0.000000e+00 : f32
    %59 = vector.broadcast %cst_40 : f32 to vector<4x6x14xf32>
    %c0_41 = arith.constant 0 : index
    %c0_42 = arith.constant 0 : index
    %c8 = arith.constant 8 : index
    %c0_43 = arith.constant 0 : index
    %60 = vector.load %arg2[%c0_41, %c0_42, %c8, %c0_43] : memref<1x4x16x16xf32, #tpu.memory_space<vmem>>, vector<1x4x6x14xf32>
    %61 = vector.shape_cast %60 : vector<1x4x6x14xf32> to vector<4x6x14xf32>
    %62 = vector.broadcast %1 : vector<4x1x1xf32> to vector<4x6x14xf32>
    %63 = arith.mulf %61, %62 : vector<4x6x14xf32>
    %64 = arith.addf %59, %63 : vector<4x6x14xf32>
    %c0_44 = arith.constant 0 : index
    %c0_45 = arith.constant 0 : index
    %c8_46 = arith.constant 8 : index
    %c1_47 = arith.constant 1 : index
    %65 = vector.load %arg2[%c0_44, %c0_45, %c8_46, %c1_47] : memref<1x4x16x16xf32, #tpu.memory_space<vmem>>, vector<1x4x6x14xf32>
    %66 = vector.shape_cast %65 : vector<1x4x6x14xf32> to vector<4x6x14xf32>
    %67 = vector.broadcast %2 : vector<4x1x1xf32> to vector<4x6x14xf32>
    %68 = arith.mulf %66, %67 : vector<4x6x14xf32>
    %69 = arith.addf %64, %68 : vector<4x6x14xf32>
    %c0_48 = arith.constant 0 : index
    %c0_49 = arith.constant 0 : index
    %c8_50 = arith.constant 8 : index
    %c2_51 = arith.constant 2 : index
    %70 = vector.load %arg2[%c0_48, %c0_49, %c8_50, %c2_51] : memref<1x4x16x16xf32, #tpu.memory_space<vmem>>, vector<1x4x6x14xf32>
    %71 = vector.shape_cast %70 : vector<1x4x6x14xf32> to vector<4x6x14xf32>
    %72 = vector.broadcast %3 : vector<4x1x1xf32> to vector<4x6x14xf32>
    %73 = arith.mulf %71, %72 : vector<4x6x14xf32>
    %74 = arith.addf %69, %73 : vector<4x6x14xf32>
    %c0_52 = arith.constant 0 : index
    %c0_53 = arith.constant 0 : index
    %c9 = arith.constant 9 : index
    %c0_54 = arith.constant 0 : index
    %75 = vector.load %arg2[%c0_52, %c0_53, %c9, %c0_54] : memref<1x4x16x16xf32, #tpu.memory_space<vmem>>, vector<1x4x6x14xf32>
    %76 = vector.shape_cast %75 : vector<1x4x6x14xf32> to vector<4x6x14xf32>
    %77 = vector.broadcast %4 : vector<4x1x1xf32> to vector<4x6x14xf32>
    %78 = arith.mulf %76, %77 : vector<4x6x14xf32>
    %79 = arith.addf %74, %78 : vector<4x6x14xf32>
    %c0_55 = arith.constant 0 : index
    %c0_56 = arith.constant 0 : index
    %c9_57 = arith.constant 9 : index
    %c1_58 = arith.constant 1 : index
    %80 = vector.load %arg2[%c0_55, %c0_56, %c9_57, %c1_58] : memref<1x4x16x16xf32, #tpu.memory_space<vmem>>, vector<1x4x6x14xf32>
    %81 = vector.shape_cast %80 : vector<1x4x6x14xf32> to vector<4x6x14xf32>
    %82 = vector.broadcast %5 : vector<4x1x1xf32> to vector<4x6x14xf32>
    %83 = arith.mulf %81, %82 : vector<4x6x14xf32>
    %84 = arith.addf %79, %83 : vector<4x6x14xf32>
    %c0_59 = arith.constant 0 : index
    %c0_60 = arith.constant 0 : index
    %c9_61 = arith.constant 9 : index
    %c2_62 = arith.constant 2 : index
    %85 = vector.load %arg2[%c0_59, %c0_60, %c9_61, %c2_62] : memref<1x4x16x16xf32, #tpu.memory_space<vmem>>, vector<1x4x6x14xf32>
    %86 = vector.shape_cast %85 : vector<1x4x6x14xf32> to vector<4x6x14xf32>
    %87 = vector.broadcast %6 : vector<4x1x1xf32> to vector<4x6x14xf32>
    %88 = arith.mulf %86, %87 : vector<4x6x14xf32>
    %89 = arith.addf %84, %88 : vector<4x6x14xf32>
    %c0_63 = arith.constant 0 : index
    %c0_64 = arith.constant 0 : index
    %c10 = arith.constant 10 : index
    %c0_65 = arith.constant 0 : index
    %90 = vector.load %arg2[%c0_63, %c0_64, %c10, %c0_65] : memref<1x4x16x16xf32, #tpu.memory_space<vmem>>, vector<1x4x6x14xf32>
    %91 = vector.shape_cast %90 : vector<1x4x6x14xf32> to vector<4x6x14xf32>
    %92 = vector.broadcast %7 : vector<4x1x1xf32> to vector<4x6x14xf32>
    %93 = arith.mulf %91, %92 : vector<4x6x14xf32>
    %94 = arith.addf %89, %93 : vector<4x6x14xf32>
    %c0_66 = arith.constant 0 : index
    %c0_67 = arith.constant 0 : index
    %c10_68 = arith.constant 10 : index
    %c1_69 = arith.constant 1 : index
    %95 = vector.load %arg2[%c0_66, %c0_67, %c10_68, %c1_69] : memref<1x4x16x16xf32, #tpu.memory_space<vmem>>, vector<1x4x6x14xf32>
    %96 = vector.shape_cast %95 : vector<1x4x6x14xf32> to vector<4x6x14xf32>
    %97 = vector.broadcast %8 : vector<4x1x1xf32> to vector<4x6x14xf32>
    %98 = arith.mulf %96, %97 : vector<4x6x14xf32>
    %99 = arith.addf %94, %98 : vector<4x6x14xf32>
    %c0_70 = arith.constant 0 : index
    %c0_71 = arith.constant 0 : index
    %c10_72 = arith.constant 10 : index
    %c2_73 = arith.constant 2 : index
    %100 = vector.load %arg2[%c0_70, %c0_71, %c10_72, %c2_73] : memref<1x4x16x16xf32, #tpu.memory_space<vmem>>, vector<1x4x6x14xf32>
    %101 = vector.shape_cast %100 : vector<1x4x6x14xf32> to vector<4x6x14xf32>
    %102 = vector.broadcast %9 : vector<4x1x1xf32> to vector<4x6x14xf32>
    %103 = arith.mulf %101, %102 : vector<4x6x14xf32>
    %104 = arith.addf %99, %103 : vector<4x6x14xf32>
    %c0_74 = arith.constant 0 : index
    %c0_75 = arith.constant 0 : index
    %c8_76 = arith.constant 8 : index
    %c0_77 = arith.constant 0 : index
    %105 = vector.load %arg4[%c0_74, %c0_75, %c8_76, %c0_77] : memref<1x4x14x14xf32, #tpu.memory_space<vmem>>, vector<1x4x6x14xf32>
    %106 = vector.shape_cast %105 : vector<1x4x6x14xf32> to vector<4x6x14xf32>
    %107 = vector.shape_cast %104 : vector<4x6x14xf32> to vector<1x4x6x14xf32>
    tpu.vector_store %arg4[%c0_74, %c0_75, %c8_76, %c0_77], %107 {strides = array<i32>} : memref<1x4x14x14xf32, #tpu.memory_space<vmem>>, vector<1x4x6x14xf32>,
    return
  }
  func.func @transform_0(%arg0: i32, %arg1: i32) -> (i32, i32, i32, i32) {
    %c0_i32 = arith.constant 0 : i32
    %c0_i32_0 = arith.constant 0 : i32
    %c0_i32_1 = arith.constant 0 : i32
    return %arg0, %arg1, %c0_i32, %c0_i32_0 : i32, i32, i32, i32
  }
  func.func @transform_1(%arg0: i32, %arg1: i32) -> (i32, i32, i32) {
    %c0_i32 = arith.constant 0 : i32
    %c0_i32_0 = arith.constant 0 : i32
    %c0_i32_1 = arith.constant 0 : i32
    return %arg1, %c0_i32, %c0_i32_0 : i32, i32, i32
  }
  func.func @transform_2(%arg0: i32, %arg1: i32) -> (i32, i32, i32, i32) {
    %c0_i32 = arith.constant 0 : i32
    %c0_i32_0 = arith.constant 0 : i32
    %c0_i32_1 = arith.constant 0 : i32
    return %arg0, %arg1, %c0_i32, %c0_i32_0 : i32, i32, i32, i32
  }
}

</mosaic_0001>

<bundles_post_ra>
// kernel: tpu_custom_call.1
= control target key start
LH: loop header
LB: loop body
LE: loop exit
PB: predicated region body
PF: predicated region fallthrough
CT: control target
= control target key end

     0   :  { %7 = vsyncpa [#allocation3], 0  ;;  %s1586_s0 = inlined_call_operand.hbm [shape: f32[2,4,16,16], index: 0, kind: input, shape index: {}]   ;;  %s1587_s1 = inlined_call_operand.vmem [shape: f32[4,3,3], index: 1, kind: input, shape index: {}]   ;;  %s1588_s2 = inlined_call_operand.vmem [shape: f32[2,4,14,14], index: 2, kind: output, shape index: {}]  }
   0x1   :  { %9 = vsyncpa [#allocation3 + $0x1], 0  ;;  %s1122_s9 = smov 0   ;;  %s1124_s10 = smov 0  }
   0x2   :  { %s1126_s11 = smov 0   ;;  %s1128_s12 = smov 0  }
   0x3   :  { %s1130_s13 = smov 0   ;;  %s1132_s14 = smov 0  }
   0x4 LB: > { %s875_s15 = sadd.s32 4294967295, %s1100_s14   ;;  %s27_s16 = sadd.s32 1, %s1096_s13  ;;  %s1100_s14 = sphi %s1132_s14, %s15_s14   ;;  %s1096_s13 = sphi %s1130_s13, %s1596_s13   ;;  %s1092_s12 = sphi %s1128_s12, %s1595_s12   ;;  %s1088_s11 = sphi %s1126_s11, %s1594_s11   ;;  %s1084_s10 = sphi %s1124_s10, %s1593_s10   ;;  %s1080_s9 = sphi %s1122_s9, %s1592_s9  }
   0x5   : > { %p29_p0 = scmp.ge.s32.totalorder %s27_s16, 2  ;;  %s36_s17 = sadd.s32 1, %s1088_s11 }
   0x6   : > { %p43_p1 = scmp.ne.s32.totalorder %s1088_s11, %s1084_s10  ;;  %p44_p2 = scmp.eq.s32.totalorder %s1100_s14, 0 }
   0x7   : > { %s1598_s16 = smov (%p29_p0, %s27_s16), 0  ;;  %p49_p4 = scmp.ne.s32.totalorder %s1084_s10, %s1080_s9 }
   0x8   : > { %p1158_p3 = por %p44_p2, %p43_p1  ;;  %s31_s19 = ssub.s32 %s1096_s13, %s1598_s16 }
   0x9   : > { %p50_p5 = scmp.eq.s32.totalorder %s875_s15, 0  ;;  %p34_p6 = scmp.eq.s32.totalorder %s31_s19, 0 }
   0xa   : > { %p969_p8 = scmp.lt.s32.totalorder %s1100_s14, 2  ;;  %s136_s22 = sand.u32 1, %s1088_s11  }
   0xb   : > { %p1165_p7 = por %p50_p5, %p49_p4  ;;  %s889_s23 = sshll.u32 %s1096_s13, 10 }
   0xc   : > { %s1171_s21 = scalar_select %p34_p6, %s1088_s11, %s36_s17  }
   0xd   : > { %s880_s24 = sshll.u32 %s136_s22, 6  ;;  %s149_s27 = scalar_lea.hbm %s1586_s0, %s889_s23 }
   0xe   : > { %s140_s28 = scalar_lea.vmem [#allocation2], %s880_s24  ;;  %p1180_p9 = pnand %p969_p8, %p1158_p3 }
   0xf   : > { %s150_s29 = sshll.u32 %s140_s28, 4  ;;  %s137_s3 = scalar_lea.sflag [#allocation3], %s136_s22  ;;  %s151_s29 = int_to_ptr.vmem [resolvable:$true] %s150_s29 }
  0x10   : > { %p1024_p10 = pneg %p1180_p9  ;;  %s1035_s4 = scalar_lea.vmem %s151_s29, 1024 }
  0x11   : > { %p1036_p11 = scmp.ne.s32.totalorder %s151_s29, %s1035_s4  ;;  %s1102_s5 = smov [#allocation2]  }
  0x12   : > { %s1040_s6 = sshll.u32 %s1102_s5, 4  ;;  %s1041_s6 = int_to_ptr.vmem [resolvable:$false] %s1040_s6 }
  0x13   : > { %p1038_p12 = pnand %p1036_p11, %p1024_p10  ;;  %s1042_s7 = scalar_lea.vmem %s1041_s6, 2048 }
  0x14   : > { %p1043_p0 = scmp.lt.s32.totalorder %s151_s29, %s1041_s6  ;;  %p1044_p1 = scmp.lt.s32.totalorder %s1042_s7, %s1035_s4 }
  0x15   : > { %p1039_p13 = pneg %p1038_p12 }
  0x16   : > { %p1045_p2 = por %p1044_p1, %p1043_p0 }
  0x18   : > { %p1046_p3 = pnand %p1045_p2, %p1039_p13 }
  0x1a   : > { %1049 = shalt.err (!%p1046_p3)
}
  0x1b   : > { %s1103_s8 = smov 128   ;;  %s1104_s9 = smov 8  }
  0x1c   : > { %968 = dma.hbm_to_vmem [thread:$0]  (!%p1180_p9), %s149_s27, 1024, %s151_s29, %s137_s3, %s1103_s8, %s1103_s8, %s1104_s9  }
  0x1d   : > { %p883_p4 = scmp.ge.s32.totalorder %s1100_s14, 1  ;;  %p158_p5 = scmp.lt.s32.totalorder %s1100_s14, 3 }
  0x1f   : > { %p159_p6 = pnand %p883_p4, %p158_p5 }
  0x20   : > { %s164_s15 = sand.u32 (!%p159_p6), 1, %s1084_s10  }
  0x21   : > { %162 = sbr.rel (%p159_p6) target bundleno = 422 (0x1a6), region = 28  ;;  %s884_s17 = sshll.u32 (!%p159_p6), %s164_s15, 6 }
  0x22   : > { %s165_s18 = scalar_lea.sflag (!%p159_p6), [#allocation3], %s164_s15  ;;  %s1191_s19 = scalar_lea.vmem (!%p159_p6), [#allocation2], %s884_s17 }
  0x26   : > { %1075 = dma.done.wait (%p1165_p7), %s165_s18, 1024  }
  0x27   : > { %1077 = vsyncadd (%p1165_p7), %s165_s18, 4294966272  ;;  %v217_v0 = vld [vmem:[%s1587_s1] sm:$0x7]  ;;  %v219_v1 = vld [vmem:[%s1587_s1 + $0x8] sm:$0x7]  ;;  %s1105_s26 = smov 127  }
  0x28   : > { %249 = vrot.lane.b32.xlu0 %v217_v0, %s1105_s26  ;;  %253 = vrot.lane.b32.xlu1 %v219_v1, %s1105_s26  ;;  %v218_v2 = vld [vmem:[%s1587_s1 + $0x4] sm:$0x7]  ;;  %891 = vpush %v217_v0  ;;  %v220_v3 = vld [vmem:[%s1587_s1 + $0xc] sm:$0x7]  ;;  %s1106_s30 = smov 126   ;;  %v341_v4 = vrot.slane %v217_v0, 1 }
  0x29   : > { %893 = vpush %v218_v2  ;;  %v342_v5 = vrot.slane %v218_v2, 1  ;;  %v343_v6 = vrot.slane %v219_v1, 1  ;;  %v344_v7 = vrot.slane %v220_v3, 1  ;;  %v457_v8 = vrot.slane %v217_v0, 2  ;;  %v1242_v36 = vld [vmem:[%s1191_s19] sm:$0xff]  ;;  %v1251_v39 = vld [vmem:[%s1191_s19 + $0x10] sm:$0xff] }
  0x2a   : > { %895 = vpush %v219_v1  ;;  %v458_v9 = vrot.slane %v218_v2, 2  ;;  %v459_v10 = vrot.slane %v219_v1, 2  ;;  %v460_v11 = vrot.slane %v220_v3, 2  ;;  %v1254_v40 = vld [vmem:[%s1191_s19 + $0x20] sm:$0xff]  ;;  %v1267_v44 = vld [vmem:[%s1191_s19 + $0x30] sm:$0xff]  ;;  %p207_p7 = scmp.lt.s32.totalorder %s1092_s12, 1 }
  0x2b   : > { %897 = vpush %v220_v3  ;;  %v1294_v53 = vld [vmem:[%s1191_s19 + $0x9] sm:$0x3f]  ;;  %v1297_v54 = vld [vmem:[%s1191_s19 + $0x18] sm:$0x3f]  ;;  %v1308_v59 = vld [vmem:[%s1191_s19 + $0x1] sm:$0xff]  ;;  %vm569_vm0 = vcmask 113664  }
  0x2c   : > { %251 = vrot.lane.b32.xlu0 %v218_v2, %s1105_s26  ;;  %255 = vrot.lane.b32.xlu1 %v220_v3, %s1105_s26  ;;  %v1302_v57 = vld [vmem:[%s1191_s19 + $0x11] sm:$0xff]  ;;  %v1305_v58 = vld [vmem:[%s1191_s19 + $0x19] sm:$0x3f]  ;;  %s1600_s12 = smov (!%p207_p7, %s1092_s12), 1  ;;  %vm754_vm1 = vcmask 111616  }
  0x2d   : > { %v1311_v61 = vld [vmem:[%s1191_s19 + $0x21] sm:$0xff]  ;;  %v1314_v62 = vld [vmem:[%s1191_s19 + $0x29] sm:$0x3f] }
  0x30   : > { %293 = vrot.lane.b32.xlu0 %v217_v0, %s1106_s30  ;;  %295 = vrot.lane.b32.xlu1 %v218_v2, %s1106_s30 }
  0x34   : > { %297 = vrot.lane.b32.xlu0 %v219_v1, %s1106_s30  ;;  %299 = vrot.lane.b32.xlu1 %v220_v3, %s1106_s30  ;;  %v1325_v3 = vld [vmem:[%s1191_s19 + $0x31] sm:$0xff] }
  0x38   : > { %365 = vrot.lane.b32.xlu0 %v341_v4, %s1105_s26  ;;  %367 = vrot.lane.b32.xlu1 %v342_v5, %s1105_s26 }
  0x3c   : > { %369 = vrot.lane.b32.xlu0 %v343_v6, %s1105_s26  ;;  %371 = vrot.lane.b32.xlu1 %v344_v7, %s1105_s26 }
  0x40   : > { %409 = vrot.lane.b32.xlu0 %v341_v4, %s1106_s30  ;;  %411 = vrot.lane.b32.xlu1 %v342_v5, %s1106_s30 }
  0x44   : > { %413 = vrot.lane.b32.xlu0 %v343_v6, %s1106_s30  ;;  %415 = vrot.lane.b32.xlu1 %v344_v7, %s1106_s30 }
  0x48   : > { %481 = vrot.lane.b32.xlu0 %v457_v8, %s1105_s26  ;;  %483 = vrot.lane.b32.xlu1 %v458_v9, %s1105_s26 }
  0x4c   : > { %485 = vrot.lane.b32.xlu0 %v459_v10, %s1105_s26  ;;  %487 = vrot.lane.b32.xlu1 %v460_v11, %s1105_s26 }
  0x50   : > { %525 = vrot.lane.b32.xlu0 %v457_v8, %s1106_s30  ;;  %527 = vrot.lane.b32.xlu1 %v458_v9, %s1106_s30 }
  0x54   : > { %529 = vrot.lane.b32.xlu0 %v459_v10, %s1106_s30  ;;  %531 = vrot.lane.b32.xlu1 %v460_v11, %s1106_s30 }
  0x59   : > { %s1233_s3 = spop %891 }
  0x5a   : > { %s1235_s4 = spop %893 }
  0x5b   : > { %s1237_s5 = spop %895 }
  0x5c   : > { %s1239_s6 = spop %897 }
  0x9a   : > { %v250_v12 = vpop.permute.xlu0 %249  ;;  %v254_v13 = vpop.permute.xlu1 %253 }
  0x9b   : > { %899 = vpush %v250_v12 }
  0x9e   : > { %v252_v14 = vpop.permute.xlu0 %251  ;;  %v256_v15 = vpop.permute.xlu1 %255 }
  0x9f   : > { %901 = vpush %v252_v14 }
  0xa0   : > { %903 = vpush %v254_v13 }
  0xa1   : > { %905 = vpush %v256_v15  ;;  %v1360_v15 = vld [vmem:[%s1191_s19 + $0x38] sm:$0x3f] }
  0xa2   : > { %v294_v16 = vpop.permute.xlu0 %293  ;;  %v296_v17 = vpop.permute.xlu1 %295 }
  0xa3   : > { %907 = vpush %v294_v16 }
  0xa4   : > { %909 = vpush %v296_v17  ;;  %v1366_v17 = vld [vmem:[%s1191_s19 + $0x28] sm:$0x3f] }
  0xa6   : > { %v298_v18 = vpop.permute.xlu0 %297  ;;  %v300_v19 = vpop.permute.xlu1 %299 }
  0xa7   : > { %911 = vpush %v298_v18 }
  0xa8   : > { %913 = vpush %v300_v19 }
  0xa9   : > { %915 = vpush %v341_v4  ;;  %v1328_v4 = vld [vmem:[%s1191_s19 + $0x39] sm:$0x3f] }
  0xaa   : > { %v366_v20 = vpop.permute.xlu0 %365  ;;  %917 = vpush %v342_v5  ;;  %v368_v21 = vpop.permute.xlu1 %367 }
  0xab   : > { %919 = vpush %v343_v6 }
  0xac   : > { %921 = vpush %v344_v7 }
  0xad   : > { %923 = vpush %v366_v20 }
  0xae   : > { %v370_v22 = vpop.permute.xlu0 %369  ;;  %925 = vpush %v368_v21  ;;  %v372_v23 = vpop.permute.xlu1 %371 }
  0xaf   : > { %927 = vpush %v370_v22  ;;  %v1391_v22 = vld [vmem:[%s1191_s19 + $0xa] sm:$0x3f] }
  0xb0   : > { %929 = vpush %v372_v23 }
  0xb2   : > { %v410_v24 = vpop.permute.xlu0 %409  ;;  %v412_v25 = vpop.permute.xlu1 %411 }
  0xb3   : > { %931 = vpush %v410_v24  ;;  %v1397_v24 = vld [vmem:[%s1191_s19 + $0x12] sm:$0xff] }
  0xb4   : > { %933 = vpush %v412_v25  ;;  %v1400_v25 = vld [vmem:[%s1191_s19 + $0x1a] sm:$0x3f] }
  0xb6   : > { %v414_v26 = vpop.permute.xlu0 %413  ;;  %v416_v27 = vpop.permute.xlu1 %415 }
  0xb7   : > { %935 = vpush %v414_v26 }
  0xb8   : > { %937 = vpush %v416_v27 }
  0xb9   : > { %939 = vpush %v457_v8 }
  0xba   : > { %v482_v28 = vpop.permute.xlu0 %481  ;;  %941 = vpush %v458_v9  ;;  %v484_v29 = vpop.permute.xlu1 %483 }
  0xbb   : > { %943 = vpush %v459_v10 }
  0xbc   : > { %945 = vpush %v460_v11  ;;  %v1344_v11 = vld [vmem:[%s1191_s19 + $0x8] sm:$0x3f] }
  0xbd   : > { %947 = vpush %v482_v28  ;;  %v1405_v28 = vld [vmem:[%s1191_s19 + $0x2] sm:$0xff] }
  0xbe   : > { %v486_v30 = vpop.permute.xlu0 %485  ;;  %949 = vpush %v484_v29  ;;  %v488_v31 = vpop.permute.xlu1 %487 }
  0xbf   : > { %951 = vpush %v486_v30  ;;  %v1408_v30 = vld [vmem:[%s1191_s19 + $0x22] sm:$0xff] }
  0xc0   : > { %953 = vpush %v488_v31  ;;  %v1411_v31 = vld [vmem:[%s1191_s19 + $0x2a] sm:$0x3f] }
  0xc2   : > { %v526_v32 = vpop.permute.xlu0 %525  ;;  %v528_v33 = vpop.permute.xlu1 %527 }
  0xc3   : > { %955 = vpush %v526_v32 }
  0xc4   : > { %957 = vpush %v528_v33 }
  0xc6   : > { %v530_v34 = vpop.permute.xlu0 %529  ;;  %v532_v35 = vpop.permute.xlu1 %531 }
  0xc7   : > { %959 = vpush %v530_v34 }
  0xc8   : > { %961 = vpush %v532_v35 }
  0xcc   : > { %s1244_s7 = spop %899 }
  0xcd   : > { %v258_v37 = vstv %s1244_s7 }
  0xce   : > { %v269_v38 = vmul.f32 %v258_v37, %v1242_v36  ;;  %v586_v16 = vmul.f32 %v1344_v11, %v258_v37  ;;  %v1422_v37 = vld [vmem:[%s1191_s19 + $0x32] sm:$0xff] }
  0xd0   : > { %s1256_s8 = spop %901  ;;  %277 = vrot.lane.b32.xlu0 %v269_v38, %s1105_s26  ;;  %v1425_v38 = vld [vmem:[%s1191_s19 + $0x3a] sm:$0x3f] }
  0xd1   : > { %v261_v41 = vstv %s1256_s8  ;;  %s1260_s9 = spop %903 }
  0xd2   : > { %v270_v42 = vmul.f32 %v261_v41, %v1251_v39  ;;  %v264_v43 = vstv %s1260_s9  ;;  %s1264_s15 = spop %905  ;;  %v587_v12 = vmul.f32 %v1297_v54, %v261_v41 }
  0xd3   : > { %v271_v45 = vmul.f32 %v264_v43, %v1254_v40  ;;  %v267_v46 = vstv %s1264_s15  ;;  %v588_v19 = vmul.f32 %v1366_v17, %v264_v43 }
  0xd4   : > { %v272_v47 = vmul.f32 %v267_v46, %v1267_v44  ;;  %s1274_s17 = spop %907  ;;  %279 = vrot.lane.b32.xlu1 %v270_v42, %s1105_s26  ;;  %v589_v18 = vmul.f32 %v1360_v15, %v267_v46 }
  0xd5   : > { %v302_v48 = vstv %s1274_s17  ;;  %281 = vrot.lane.b32.xlu0 %v271_v45, %s1105_s26  ;;  %s1279_s18 = spop %909 }
  0xd6   : > { %v313_v49 = vmul.f32 %v302_v48, %v1242_v36  ;;  %v305_v50 = vstv %s1279_s18  ;;  %v610_v23 = vmul.f32 %v1344_v11, %v302_v48 }
  0xd7   : > { %v314_v51 = vmul.f32 %v305_v50, %v1251_v39  ;;  %v611_v20 = vmul.f32 %v1297_v54, %v305_v50 }
  0xd8   : > { %s1286_s22 = spop %911  ;;  %283 = vrot.lane.b32.xlu1 %v272_v47, %s1105_s26 }
  0xd9   : > { %v308_v52 = vstv %s1286_s22  ;;  %321 = vrot.lane.b32.xlu0 %v313_v49, %s1106_s30  ;;  %s1291_s23 = spop %913 }
  0xda   : > { %v315_v55 = vmul.f32 %v308_v52, %v1254_v40  ;;  %v311_v56 = vstv %s1291_s23  ;;  %s916_s24 = spop %915  ;;  %v612_v26 = vmul.f32 %v1366_v17, %v308_v52 }
  0xdb   : > { %v346_v60 = vstv %s916_s24  ;;  %s918_s25 = spop %917  ;;  %v316_v63 = vmul.f32 %v311_v56, %v1267_v44  ;;  %v613_v27 = vmul.f32 %v1360_v15, %v311_v56 }
  0xdc   : > { %323 = vrot.lane.b32.xlu1 %v314_v51, %s1106_s30  ;;  %v1319_v0 = vmul.f32 %v346_v60, %v1308_v59  ;;  %v1322_v1 = vmul.f32 %v1294_v53, %v346_v60  ;;  %v349_v2 = vstv %s918_s25  ;;  %s920_s27 = spop %919 }
  0xdd   : > { %325 = vrot.lane.b32.xlu0 %v315_v55, %s1106_s30  ;;  %v1332_v5 = vmul.f32 %v349_v2, %v1302_v57  ;;  %v1335_v6 = vmul.f32 %v1305_v58, %v349_v2  ;;  %v352_v7 = vstv %s920_s27  ;;  %s922_s28 = spop %921 }
  0xde   : > { %v1338_v8 = vmul.f32 %v352_v7, %v1311_v61  ;;  %v1341_v9 = vmul.f32 %v1314_v62, %v352_v7  ;;  %v355_v10 = vstv %s922_s28  ;;  %s1354_s20 = spop %923 }
  0xdf   : > { %v1348_v13 = vmul.f32 %v355_v10, %v1325_v3  ;;  %v1351_v14 = vmul.f32 %v1328_v4, %v355_v10  ;;  %s1357_s29 = spop %925  ;;  %v374_v21 = vstv %s1354_s20 }
  0xe0   : > { %327 = vrot.lane.b32.xlu1 %v316_v63, %s1106_s30  ;;  %s1369_s8 = spop %927  ;;  %v385_v32 = vmul.f32 %v374_v21, %v1308_v59  ;;  %v377_v41 = vstv %s1357_s29  ;;  %v646_v63 = vmul.f32 %v1294_v53, %v374_v21 }
  0xe1   : > { %596 = vrot.lane.b32.xlu0 %v587_v12, %s1105_s26  ;;  %s1372_s15 = spop %929  ;;  %v380_v46 = vstv %s1369_s8  ;;  %v386_v52 = vmul.f32 %v377_v41, %v1302_v57  ;;  %v647_v2 = vmul.f32 %v1305_v58, %v377_v41 }
  0xe2   : > { %v387_v55 = vmul.f32 %v380_v46, %v1311_v61  ;;  %v383_v56 = vstv %s1372_s15  ;;  %v648_v10 = vmul.f32 %v1314_v62, %v380_v46 }
  0xe3   : > { %v388_v60 = vmul.f32 %v383_v56, %v1325_v3 }
  0xe4   : > { %594 = vrot.lane.b32.xlu1 %v586_v16, %s1105_s26  ;;  %s1375_s18 = spop %931 }
  0xe5   : > { %600 = vrot.lane.b32.xlu0 %v589_v18, %s1105_s26  ;;  %s1380_s7 = spop %933  ;;  %v418_v7 = vstv %s1375_s18  ;;  %v649_v18 = vmul.f32 %v1328_v4, %v383_v56 }
  0xe6   : > { %v429_v12 = vmul.f32 %v418_v7, %v1308_v59  ;;  %v421_v16 = vstv %s1380_s7  ;;  %v670_v59 = vmul.f32 %v1294_v53, %v418_v7 }
  0xe8   : > { %598 = vrot.lane.b32.xlu1 %v588_v19, %s1105_s26  ;;  %s1384_s22 = spop %935 }
  0xe9   : > { %620 = vrot.lane.b32.xlu0 %v611_v20, %s1106_s30  ;;  %s1388_s23 = spop %937  ;;  %v424_v19 = vstv %s1384_s22  ;;  %v430_v20 = vmul.f32 %v421_v16, %v1302_v57  ;;  %v671_v57 = vmul.f32 %v1305_v58, %v421_v16  ;;  %v231_v16 = vstv %s1235_s4 }
  0xea   : > { %s940_s9 = spop %939  ;;  %v431_v21 = vmul.f32 %v424_v19, %v1311_v61 }
  0xeb   : > { %v462_v29 = vstv %s940_s9  ;;  %s942_s24 = spop %941 }
  0xec   : > { %618 = vrot.lane.b32.xlu1 %v610_v23, %s1106_s30  ;;  %v1416_v33 = vmul.f32 %v462_v29, %v1405_v28  ;;  %v1419_v34 = vmul.f32 %v1391_v22, %v462_v29  ;;  %v465_v35 = vstv %s942_s24  ;;  %s944_s17 = spop %943  ;;  %v427_v23 = vstv %s1388_s23 }
  0xed   : > { %624 = vrot.lane.b32.xlu0 %v613_v27, %s1106_s30  ;;  %v1430_v42 = vmul.f32 %v465_v35, %v1397_v24  ;;  %v1433_v43 = vmul.f32 %v1400_v25, %v465_v35  ;;  %v468_v45 = vstv %s944_s17  ;;  %s946_s25 = spop %945  ;;  %v672_v27 = vmul.f32 %v1314_v62, %v424_v19 }
  0xee   : > { %v1437_v47 = vmul.f32 %v468_v45, %v1408_v30  ;;  %v1440_v48 = vmul.f32 %v1411_v31, %v468_v45  ;;  %v471_v49 = vstv %s946_s25  ;;  %s948_s19 = spop %947  ;;  %v673_v53 = vmul.f32 %v1328_v4, %v427_v23 }
  0xef   : > { %v1443_v50 = vmul.f32 %v471_v49, %v1422_v37  ;;  %v1446_v51 = vmul.f32 %v1425_v38, %v471_v49  ;;  %s950_s27 = spop %949  ;;  %v490_v61 = vstv %s948_s19  ;;  %v235_v19 = vstv %s1237_s5 }
  0xf0   : > { %622 = vrot.lane.b32.xlu1 %v612_v26, %s1106_s30  ;;  %v432_v26 = vmul.f32 %v427_v23, %v1325_v3  ;;  %s952_s28 = spop %951  ;;  %v501_v3 = vmul.f32 %v490_v61, %v1405_v28  ;;  %v493_v29 = vstv %s950_s27  ;;  %v706_v45 = vmul.f32 %v1391_v22, %v490_v61 }
  0xf1   : > { %393 = vrot.lane.b32.xlu0 %v385_v32, %s1105_s26  ;;  %v496_v32 = vstv %s952_s28  ;;  %s954_s20 = spop %953  ;;  %v502_v35 = vmul.f32 %v493_v29, %v1397_v24  ;;  %v707_v4 = vmul.f32 %v1400_v25, %v493_v29  ;;  %v239_v61 = vstv %s1239_s6 }
  0xf2   : > { %v503_v58 = vmul.f32 %v496_v32, %v1408_v30  ;;  %v499_v62 = vstv %s954_s20  ;;  %v708_v49 = vmul.f32 %v1411_v31, %v496_v32 }
  0xf3   : > { %v504_v41 = vmul.f32 %v499_v62, %v1422_v37  ;;  %v709_v56 = vmul.f32 %v1425_v38, %v499_v62 }
  0xf4   : > { %395 = vrot.lane.b32.xlu1 %v386_v52, %s1105_s26  ;;  %s956_s29 = spop %955 }
  0xf5   : > { %397 = vrot.lane.b32.xlu0 %v387_v55, %s1105_s26  ;;  %s958_s8 = spop %957  ;;  %v534_v46 = vstv %s956_s29 }
  0xf6   : > { %v545_v52 = vmul.f32 %v534_v46, %v1405_v28  ;;  %v537_v55 = vstv %s958_s8 }
  0xf8   : > { %399 = vrot.lane.b32.xlu1 %v388_v60, %s1105_s26  ;;  %s960_s15 = spop %959 }
  0xf9   : > { %654 = vrot.lane.b32.xlu0 %v646_v63, %s1105_s26  ;;  %v540_v60 = vstv %s960_s15  ;;  %s962_s18 = spop %961  ;;  %v546_v63 = vmul.f32 %v537_v55, %v1397_v24  ;;  %v731_v24 = vmul.f32 %v1400_v25, %v537_v55  ;;  %v242_v25 = vmul.f32 %v231_v16, %v1251_v39 }
  0xfa   : > { %v543_v7 = vstv %s962_s18 }
  0xfb   : > { %v548_v28 = vmul.f32 %v543_v7, %v1422_v37  ;;  %v733_v37 = vmul.f32 %v1425_v38, %v543_v7 }
  0xfc   : > { %656 = vrot.lane.b32.xlu1 %v647_v2, %s1105_s26  ;;  %v547_v2 = vmul.f32 %v540_v60, %v1408_v30  ;;  %v732_v30 = vmul.f32 %v1411_v31, %v540_v60  ;;  %v243_v31 = vmul.f32 %v235_v19, %v1254_v40 }
  0xfd   : > { %658 = vrot.lane.b32.xlu0 %v648_v10, %s1105_s26  ;;  %v730_v10 = vmul.f32 %v1391_v22, %v534_v46 }
 0x100   : > { %660 = vrot.lane.b32.xlu1 %v649_v18, %s1105_s26 }
 0x101   : > { %437 = vrot.lane.b32.xlu0 %v429_v12, %s1106_s30  ;;  %v227_v12 = vstv %s1233_s3 }
 0x102   : > { %v241_v22 = vmul.f32 %v227_v12, %v1242_v36  ;;  %v244_v36 = vmul.f32 %v239_v61, %v1267_v44  ;;  %v578_v44 = vmul.f32 %v1344_v11, %v227_v12 }
 0x104   : > { %439 = vrot.lane.b32.xlu1 %v430_v20, %s1106_s30 }
 0x105   : > { %441 = vrot.lane.b32.xlu0 %v431_v21, %s1106_s30 }
 0x108   : > { %443 = vrot.lane.b32.xlu1 %v432_v26, %s1106_s30 }
 0x109   : > { %678 = vrot.lane.b32.xlu0 %v670_v59, %s1106_s30 }
 0x10c   : > { %680 = vrot.lane.b32.xlu1 %v671_v57, %s1106_s30 }
 0x10d   : > { %682 = vrot.lane.b32.xlu0 %v672_v27, %s1106_s30 }
 0x110   : > { %684 = vrot.lane.b32.xlu1 %v673_v53, %s1106_s30 }
 0x111   : > { %509 = vrot.lane.b32.xlu0 %v501_v3, %s1105_s26 }
 0x114   : > { %511 = vrot.lane.b32.xlu1 %v502_v35, %s1105_s26 }
 0x115   : > { %513 = vrot.lane.b32.xlu0 %v503_v58, %s1105_s26 }
 0x118   : > { %515 = vrot.lane.b32.xlu1 %v504_v41, %s1105_s26 }
 0x119   : > { %714 = vrot.lane.b32.xlu0 %v706_v45, %s1105_s26 }
 0x11c   : > { %716 = vrot.lane.b32.xlu1 %v707_v4, %s1105_s26 }
 0x11d   : > { %718 = vrot.lane.b32.xlu0 %v708_v49, %s1105_s26 }
 0x120   : > { %720 = vrot.lane.b32.xlu1 %v709_v56, %s1105_s26  ;;  %s890_s26 = sshll.u32 %s1600_s12, 6 }
 0x121   : > { %553 = vrot.lane.b32.xlu0 %v545_v52, %s1106_s30  ;;  %v579_v52 = vmul.f32 %v1297_v54, %v231_v16  ;;  %s1550_s4 = scalar_lea.vmem %s1588_s2, %s890_s26 }
 0x124   : > { %555 = vrot.lane.b32.xlu1 %v546_v63, %s1106_s30 }
 0x125   : > { %557 = vrot.lane.b32.xlu0 %v547_v2, %s1106_s30 }
 0x128   : > { %559 = vrot.lane.b32.xlu1 %v548_v28, %s1106_s30 }
 0x129   : > { %738 = vrot.lane.b32.xlu0 %v730_v10, %s1106_s30 }
 0x12c   : > { %740 = vrot.lane.b32.xlu1 %v731_v24, %s1106_s30 }
 0x12d   : > { %742 = vrot.lane.b32.xlu0 %v732_v30, %s1106_s30 }
 0x130   : > { %744 = vrot.lane.b32.xlu1 %v733_v37, %s1106_s30 }
 0x142   : > { %v278_v18 = vpop.permute.xlu0 %277 }
 0x143   : > { %v289_v20 = vadd.f32 %v278_v18, %v241_v22 }
 0x146   : > { %v280_v21 = vpop.permute.xlu1 %279 }
 0x147   : > { %v290_v23 = vadd.f32 %v280_v21, %v242_v25  ;;  %v282_v26 = vpop.permute.xlu0 %281 }
 0x148   : > { %v291_v59 = vadd.f32 %v282_v26, %v243_v31  ;;  %v581_v26 = vmul.f32 %v1360_v15, %v239_v61 }
 0x14a   : > { %v284_v57 = vpop.permute.xlu1 %283 }
 0x14b   : > { %v322_v38 = vpop.permute.xlu0 %321  ;;  %v292_v58 = vadd.f32 %v284_v57, %v244_v36 }
 0x14c   : > { %v333_v27 = vadd.f32 %v322_v38, %v289_v20 }
 0x14e   : > { %v324_v3 = vpop.permute.xlu1 %323  ;;  %v361_v29 = vadd.f32 %v1319_v0, %v333_v27 }
 0x14f   : > { %v334_v53 = vadd.f32 %v324_v3, %v290_v23  ;;  %v326_v32 = vpop.permute.xlu0 %325 }
 0x150   : > { %v335_v35 = vadd.f32 %v326_v32, %v291_v59 }
 0x151   : > { %v362_v39 = vadd.f32 %v1332_v5, %v334_v53 }
 0x152   : > { %v328_v40 = vpop.permute.xlu1 %327  ;;  %v363_v62 = vadd.f32 %v1338_v8, %v335_v35  ;;  %v580_v8 = vmul.f32 %v1366_v17, %v235_v19 }
 0x153   : > { %v336_v41 = vadd.f32 %v328_v40, %v292_v58  ;;  %v597_v45 = vpop.permute.xlu0 %596 }
 0x154   : > { %v607_v0 = vadd.f32 %v597_v45, %v579_v52 }
 0x155   : > { %v364_v4 = vadd.f32 %v1348_v13, %v336_v41 }
 0x156   : > { %v595_v46 = vpop.permute.xlu1 %594 }
 0x157   : > { %v601_v49 = vpop.permute.xlu0 %600  ;;  %v606_v63 = vadd.f32 %v595_v46, %v578_v44 }
 0x158   : > { %v609_v38 = vadd.f32 %v601_v49, %v581_v26 }
 0x15a   : > { %v599_v55 = vpop.permute.xlu1 %598 }
 0x15b   : > { %v621_v56 = vpop.permute.xlu0 %620  ;;  %v608_v10 = vadd.f32 %v599_v55, %v580_v8 }
 0x15c   : > { %v631_v60 = vadd.f32 %v621_v56, %v607_v0 }
 0x15e   : > { %v619_v2 = vpop.permute.xlu1 %618  ;;  %v643_v5 = vadd.f32 %v1335_v6, %v631_v60 }
 0x15f   : > { %v630_v7 = vadd.f32 %v619_v2, %v606_v63  ;;  %v625_v28 = vpop.permute.xlu0 %624 }
 0x160   : > { %v633_v32 = vadd.f32 %v625_v28, %v609_v38 }
 0x161   : > { %v642_v13 = vadd.f32 %v1322_v1, %v630_v7 }
 0x162   : > { %v623_v24 = vpop.permute.xlu1 %622  ;;  %v645_v41 = vadd.f32 %v1351_v14, %v633_v32 }
 0x163   : > { %v632_v30 = vadd.f32 %v623_v24, %v608_v10  ;;  %v394_v54 = vpop.permute.xlu0 %393 }
 0x164   : > { %v405_v25 = vadd.f32 %v394_v54, %v361_v29 }
 0x165   : > { %v644_v37 = vadd.f32 %v1341_v9, %v632_v30 }
 0x166   : > { %v396_v22 = vpop.permute.xlu1 %395 }
 0x167   : > { %v398_v11 = vpop.permute.xlu0 %397  ;;  %v406_v19 = vadd.f32 %v396_v22, %v362_v39 }
 0x168   : > { %v407_v21 = vadd.f32 %v398_v11, %v363_v62 }
 0x16a   : > { %v400_v12 = vpop.permute.xlu1 %399 }
 0x16b   : > { %v655_v16 = vpop.permute.xlu0 %654  ;;  %v408_v27 = vadd.f32 %v400_v12, %v364_v4 }
 0x16c   : > { %v666_v36 = vadd.f32 %v655_v16, %v642_v13 }
 0x16e   : > { %v657_v18 = vpop.permute.xlu1 %656 }
 0x16f   : > { %v659_v20 = vpop.permute.xlu0 %658  ;;  %v667_v40 = vadd.f32 %v657_v18, %v643_v5 }
 0x170   : > { %v668_v62 = vadd.f32 %v659_v20, %v644_v37 }
 0x172   : > { %v661_v6 = vpop.permute.xlu1 %660 }
 0x173   : > { %v438_v31 = vpop.permute.xlu0 %437  ;;  %v669_v46 = vadd.f32 %v661_v6, %v645_v41 }
 0x174   : > { %v449_v17 = vadd.f32 %v438_v31, %v405_v25 }
 0x176   : > { %v440_v23 = vpop.permute.xlu1 %439  ;;  %v477_v1 = vadd.f32 %v1416_v33, %v449_v17 }
 0x177   : > { %v450_v59 = vadd.f32 %v440_v23, %v406_v19  ;;  %v442_v57 = vpop.permute.xlu0 %441 }
 0x178   : > { %v451_v9 = vadd.f32 %v442_v57, %v407_v21 }
 0x179   : > { %v478_v3 = vadd.f32 %v1430_v42, %v450_v59 }
 0x17a   : > { %v444_v53 = vpop.permute.xlu1 %443  ;;  %v479_v29 = vadd.f32 %v1437_v47, %v451_v9 }
 0x17b   : > { %v452_v35 = vadd.f32 %v444_v53, %v408_v27  ;;  %v679_v58 = vpop.permute.xlu0 %678 }
 0x17c   : > { %v690_v39 = vadd.f32 %v679_v58, %v666_v36 }
 0x17d   : > { %v480_v33 = vadd.f32 %v1443_v50, %v452_v35 }
 0x17e   : > { %v681_v15 = vpop.permute.xlu1 %680  ;;  %v702_v61 = vadd.f32 %v1419_v34, %v690_v39 }
 0x17f   : > { %v691_v42 = vadd.f32 %v681_v15, %v667_v40  ;;  %v683_v45 = vpop.permute.xlu0 %682 }
 0x180   : > { %v692_v4 = vadd.f32 %v683_v45, %v668_v62 }
 0x181   : > { %v703_v47 = vadd.f32 %v1433_v43, %v691_v42 }
 0x182   : > { %v685_v49 = vpop.permute.xlu1 %684  ;;  %v704_v52 = vadd.f32 %v1440_v48, %v692_v4 }
 0x183   : > { %v693_v0 = vadd.f32 %v685_v49, %v669_v46  ;;  %v510_v55 = vpop.permute.xlu0 %509 }
 0x184   : > { %v521_v2 = vadd.f32 %v510_v55, %v477_v1 }
 0x185   : > { %v705_v50 = vadd.f32 %v1446_v51, %v693_v0 }
 0x186   : > { %v512_v44 = vpop.permute.xlu1 %511 }
 0x187   : > { %v514_v56 = vpop.permute.xlu0 %513  ;;  %v522_v51 = vadd.f32 %v512_v44, %v478_v3 }
 0x188   : > { %v523_v8 = vadd.f32 %v514_v56, %v479_v29 }
 0x18a   : > { %v516_v34 = vpop.permute.xlu1 %515 }
 0x18b   : > { %v715_v60 = vpop.permute.xlu0 %714  ;;  %v524_v24 = vadd.f32 %v516_v34, %v480_v33 }
 0x18c   : > { %v726_v30 = vadd.f32 %v715_v60, %v702_v61 }
 0x18e   : > { %v717_v14 = vpop.permute.xlu1 %716 }
 0x18f   : > { %v719_v63 = vpop.permute.xlu0 %718  ;;  %v727_v12 = vadd.f32 %v717_v14, %v703_v47 }
 0x190   : > { %v728_v16 = vadd.f32 %v719_v63, %v704_v52 }
 0x192   : > { %v721_v5 = vpop.permute.xlu1 %720 }
 0x193   : > { %v554_v43 = vpop.permute.xlu0 %553  ;;  %v729_v31 = vadd.f32 %v721_v5, %v705_v50 }
 0x194   : > { %v565_v48 = vadd.f32 %v554_v43, %v521_v2 }
 0x196   : > { %570 = vst.msk [vmem:[%s1550_s4] sm:$0xff] %vm569_vm0, %v565_v48  ;;  %v556_v7 = vpop.permute.xlu1 %555 }
 0x197   : > { %v566_v28 = vadd.f32 %v556_v7, %v522_v51  ;;  %v558_v10 = vpop.permute.xlu0 %557 }
 0x198   : > { %v567_v13 = vadd.f32 %v558_v10, %v523_v8 }
 0x199   : > { %571 = vst.msk [vmem:[%s1550_s4 + $0x10] sm:$0xff] %vm569_vm0, %v566_v28 }
 0x19a   : > { %572 = vst.msk [vmem:[%s1550_s4 + $0x20] sm:$0xff] %vm569_vm0, %v567_v13  ;;  %v560_v54 = vpop.permute.xlu1 %559 }
 0x19b   : > { %v568_v37 = vadd.f32 %v560_v54, %v524_v24  ;;  %v739_v22 = vpop.permute.xlu0 %738 }
 0x19c   : > { %v750_v11 = vadd.f32 %v739_v22, %v726_v30 }
 0x19d   : > { %573 = vst.msk [vmem:[%s1550_s4 + $0x30] sm:$0xff] %vm569_vm0, %v568_v37 }
 0x19e   : > { %755 = vst.msk [vmem:[%s1550_s4 + $0x8] sm:$0x3f] %vm754_vm1, %v750_v11  ;;  %v741_v18 = vpop.permute.xlu1 %740 }
 0x19f   : > { %v751_v20 = vadd.f32 %v741_v18, %v727_v12  ;;  %v743_v25 = vpop.permute.xlu0 %742 }
 0x1a0   : > { %v752_v6 = vadd.f32 %v743_v25, %v728_v16 }
 0x1a1   : > { %756 = vst.msk [vmem:[%s1550_s4 + $0x18] sm:$0x3f] %vm754_vm1, %v751_v20 }
 0x1a2   : > { %757 = vst.msk [vmem:[%s1550_s4 + $0x28] sm:$0x3f] %vm754_vm1, %v752_v6  ;;  %v745_v17 = vpop.permute.xlu1 %744 }
 0x1a3   : > { %v753_v19 = vadd.f32 %v745_v17, %v729_v31 }
 0x1a5   : > { %758 = vst.msk [vmem:[%s1550_s4 + $0x38] sm:$0x3f] %vm754_vm1, %v753_v19 }
 0x1a6 PF: > { %s15_s14 = sadd.s32 1, %s1100_s14   ;;  %s1592_s9 = smov %s1084_s10 }
 0x1a7   : > { %p12_p8 = scmp.ge.s32.totalorder %s15_s14, 4   ;;  %s1593_s10 = smov %s1088_s11 }
 0x1a8   : > { %s1594_s11 = smov %s1171_s21  ;;  %s1595_s12 = smov %s1096_s13 }
 0x1a9   : > { %s1596_s13 = smov %s1598_s16  ;;  %14 = sbr.rel (!%p12_p8) target bundleno = 4 (0x4), region = 71 }
 0x1ae   :  { %791 = vsyncpa [#allocation3], 1 }
 0x1af   :  { %793 = vsyncpa [#allocation3 + $0x1], 1 }

</bundles_post_ra>
